<compile_context>
chip_gen: v5e
topology: v5e:2x2
jax: 0.10.0
libtpu: 0.0.40
codegen_flags: <defaults>
</compile_context>

<pallas_src>
import functools

import jax
import jax.numpy as jnp
from jax.experimental import pallas as pl
from jax.experimental.pallas import tpu as pltpu

LANE = 128       # TPU vreg lane width
SUBLANE = 16     # sublane multiple that satisfies both f32 (8) and bf16 (16) tiles


def _round_up(x, m):
    return (x + m - 1) // m * m


# ---------------------------------------------------------------------------
# Pallas kernel: fused Linear + ReLU on one M-tile
# ---------------------------------------------------------------------------
def linear_relu_kernel(x_ref, w_ref, b_ref, o_ref):
    """x_ref: (TM, K)  f32/bf16  flattened-input rows
       w_ref: (K, Cp)  bf16      transposed, lane-padded Linear weight (resident)
       b_ref: (1, Cp)  f32       lane-padded bias (resident)
       o_ref: (TM, Cp) bf16      lane-dense output tile
    """
    x_bf = x_ref[...].astype(jnp.bfloat16)                  # bf16 MXU operands
    y = jnp.dot(x_bf, w_ref[...], preferred_element_type=jnp.float32)  # f32 acc
    o_ref[...] = jnp.maximum(y + b_ref[...], 0.0).astype(o_ref.dtype)  # bias+ReLU


# ---------------------------------------------------------------------------
# One-time parameter prep (hoisted off the per-call path)
# ---------------------------------------------------------------------------
def prepare_params(w, b):
    """w: (out_features, in_features) PyTorch Linear weight; b: (out_features,).

    Returns (w^T zero-padded to 128 lanes, bf16), (bias padded, f32), out_features.
    """
    out_f, in_f = w.shape
    cp = _round_up(out_f, LANE)
    w_t = jnp.zeros((in_f, cp), jnp.float32).at[:, :out_f].set(w.T)
    b_p = jnp.zeros((1, cp), jnp.float32).at[:, :out_f].set(b.reshape(1, -1))
    return w_t.astype(jnp.bfloat16), b_p, out_f


# ---------------------------------------------------------------------------
# Tile-size selection (HBM-bound: as big as VMEM comfortably allows)
# ---------------------------------------------------------------------------
def _pick_tm(n):
    # 1024 rows of f32 activations double-buffered = 24 MiB, well inside the
    # 48 MiB scoped-VMEM budget we request below (plus ~2 MiB weight/out).
    cap = 1024
    tiles_target = 1
    try:
        kind = jax.devices()[0].device_kind.lower()
        # Multi-TensorCore chips: make sure the "parallel" grid has >= 2 tiles.
        if any(t in kind for t in ("v7", "v4", "v5p")):
            tiles_target = 2
    except Exception:
        pass
    tm = _round_up(pl.cdiv(n, tiles_target), SUBLANE)
    return max(SUBLANE, min(cap, tm))


# ---------------------------------------------------------------------------
# Jitted forward wrapper
# ---------------------------------------------------------------------------
@functools.partial(jax.jit, static_argnames=("out_features",))
def feedforward_forward(x, w_bf16, b_pad, *, out_features):
    n = x.shape[0]
    x2 = x.reshape(n, -1)                       # flatten(start_dim=1), no copy pass
    if x2.dtype not in (jnp.dtype(jnp.float32), jnp.dtype(jnp.bfloat16)):
        x2 = x2.astype(jnp.float32)
    k = x2.shape[1]
    cp = w_bf16.shape[1]

    tm = _pick_tm(n)
    grid = (pl.cdiv(n, tm),)                    # ragged last block, no jnp.pad copy

    cost = pl.CostEstimate(
        flops=2 * n * k * cp,
        transcendentals=0,
        bytes_accessed=n * k * x2.dtype.itemsize + k * cp * 2 + cp * 4 + n * cp * 2,
    )

    out = pl.pallas_call(
        linear_relu_kernel,
        out_shape=jax.ShapeDtypeStruct((n, cp), jnp.bfloat16),
        grid_spec=pltpu.PrefetchScalarGridSpec(
            num_scalar_prefetch=0,
            grid=grid,
            in_specs=[
                pl.BlockSpec((tm, k), lambda i: (i, 0)),   # activation rows, pipelined
                pl.BlockSpec((k, cp), lambda i: (0, 0)),   # weight: resident
                pl.BlockSpec((1, cp), lambda i: (0, 0)),   # bias:   resident
            ],
            out_specs=pl.BlockSpec((tm, cp), lambda i: (i, 0)),
        ),
        compiler_params=pltpu.CompilerParams(
            dimension_semantics=("parallel",),   # megacore: split M tiles across TCs
            vmem_limit_bytes=48 * 1024 * 1024,   # 1024-row tiles legal on v5e/v6e/v7x
        ),
        cost_estimate=cost,
    )(x2, w_bf16, b_pad)

    # Drop lane padding; restore the module's f32 output dtype (tiny (n,10) op).
    return out[:, :out_features].astype(jnp.float32)


# ---------------------------------------------------------------------------
# Pure-JAX fp32 reference (self-check)
# ---------------------------------------------------------------------------
def reference_forward(x, w, b):
    xf = x.reshape(x.shape[0], -1).astype(jnp.float32)
    return jnp.maximum(xf @ w.T + b, 0.0)


# ---------------------------------------------------------------------------
# Main
# ---------------------------------------------------------------------------
if __name__ == "__main__":
    N, C, H, W = 2, 3, 32, 32                   # 3*32*32 = 3072 = Linear in_features
    in_features, out_features = C * H * W, 10

    key = jax.random.PRNGKey(0)
    kx, kw, kb = jax.random.split(key, 3)

    # PyTorch Linear(3072, 10)-style init: weight (out, in), bias (out,)
    bound = 1.0 / (in_features ** 0.5)
    w = jax.random.uniform(kw, (out_features, in_features), jnp.float32, -bound, bound)
    b = jax.random.uniform(kb, (out_features,), jnp.float32, -bound, bound)
    x = jax.random.normal(kx, (N, C, H, W), jnp.float32)

    w_prep, b_prep, out_f = prepare_params(w, b)

    # N=2 is neither a multiple of 8 nor of the 16-row tile -> exercises the
    # ragged (unpadded) last block path.
    out = jax.block_until_ready(
        feedforward_forward(x, w_prep, b_prep, out_features=out_f)
    )
    ref = jax.block_until_ready(reference_forward(x, w, b))

    assert out.shape == (N, out_features), out.shape
    # bf16 MXU operands + bf16 store, fp32 accumulation -> small slack vs f32 ref.
    err = float(jnp.max(jnp.abs(out - ref)))
    assert err < 5e-2, err

    print("KERNEL_OK")
</pallas_src>

<mosaic_0001>
module attributes {stable_mosaic.version = 11 : i64} {
  func.func @linear_relu_kernel(%arg0: i32, %arg1: memref<16x3072xf32, #tpu.memory_space<vmem>>, %arg2: memref<3072x128xbf16, #tpu.memory_space<vmem>>, %arg3: memref<1x128xf32, #tpu.memory_space<vmem>>, %arg4: memref<16x128xbf16, #tpu.memory_space<vmem>>) attributes {dimension_semantics = [#tpu.dimension_semantics<parallel>], iteration_bounds = array<i64: 1>, scalar_prefetch = 0 : i64, scratch_operands = 0 : i64, tpu.core_type = #tpu.core_type<tc>, window_params = [{transform_indices = @transform_0, window_bounds = array<i64: 16, 3072>}, {pipeline_mode = #tpu.pipeline_mode<synchronous>, transform_indices = @transform_1, window_bounds = array<i64: 3072, 128>}, {pipeline_mode = #tpu.pipeline_mode<synchronous>, transform_indices = @transform_2, window_bounds = array<i64: 1, 128>}, {transform_indices = @transform_3, window_bounds = array<i64: 16, 128>}]} {
    %c0 = arith.constant 0 : index
    %c0_0 = arith.constant 0 : index
    %0 = vector.load %arg1[%c0, %c0_0] : memref<16x3072xf32, #tpu.memory_space<vmem>>, vector<16x3072xf32>
    %1 = arith.truncf %0 : vector<16x3072xf32> to vector<16x3072xbf16>
    %c0_1 = arith.constant 0 : index
    %c0_2 = arith.constant 0 : index
    %2 = vector.load %arg2[%c0_1, %c0_2] : memref<3072x128xbf16, #tpu.memory_space<vmem>>, vector<3072x128xbf16>
    %cst = arith.constant dense<0.000000e+00> : vector<16x128xf32>
    %3 = tpu.matmul %1, %2, %cst {dimension_numbers = #tpu.dot_dimension_numbers<[1], [0], [0], [1], [0, 0, 1, 1], [], []>} : vector<16x3072xbf16>, vector<3072x128xbf16>, vector<16x128xf32> -> vector<16x128xf32>
    %c0_3 = arith.constant 0 : index
    %c0_4 = arith.constant 0 : index
    %4 = vector.load %arg3[%c0_3, %c0_4] : memref<1x128xf32, #tpu.memory_space<vmem>>, vector<1x128xf32>
    %5 = vector.broadcast %4 : vector<1x128xf32> to vector<16x128xf32>
    %6 = arith.addf %3, %5 : vector<16x128xf32>
    %cst_5 = arith.constant 0.000000e+00 : f32
    %7 = vector.broadcast %cst_5 : f32 to vector<16x128xf32>
    %8 = arith.maximumf %6, %7 : vector<16x128xf32>
    %9 = arith.truncf %8 : vector<16x128xf32> to vector<16x128xbf16>
    %c0_6 = arith.constant 0 : index
    %c0_7 = arith.constant 0 : index
    %10 = vector.load %arg4[%c0_6, %c0_7] : memref<16x128xbf16, #tpu.memory_space<vmem>>, vector<16x128xbf16>
    tpu.vector_store %arg4[%c0_6, %c0_7], %9 {strides = array<i32>} : memref<16x128xbf16, #tpu.memory_space<vmem>>, vector<16x128xbf16>,
    return
  }
  func.func @transform_0(%arg0: i32) -> (i32, i32) {
    %c0_i32 = arith.constant 0 : i32
    %c0_i32_0 = arith.constant 0 : i32
    return %arg0, %c0_i32 : i32, i32
  }
  func.func @transform_1(%arg0: i32) -> (i32, i32) {
    %c0_i32 = arith.constant 0 : i32
    %c0_i32_0 = arith.constant 0 : i32
    %c0_i32_1 = arith.constant 0 : i32
    return %c0_i32, %c0_i32_0 : i32, i32
  }
  func.func @transform_2(%arg0: i32) -> (i32, i32) {
    %c0_i32 = arith.constant 0 : i32
    %c0_i32_0 = arith.constant 0 : i32
    %c0_i32_1 = arith.constant 0 : i32
    return %c0_i32, %c0_i32_0 : i32, i32
  }
  func.func @transform_3(%arg0: i32) -> (i32, i32) {
    %c0_i32 = arith.constant 0 : i32
    %c0_i32_0 = arith.constant 0 : i32
    return %arg0, %c0_i32 : i32, i32
  }
}

</mosaic_0001>

<bundles_post_ra>
// kernel: feedforward_forward.1
= control target key start
LH: loop header
LB: loop body
LE: loop exit
PB: predicated region body
PF: predicated region fallthrough
CT: control target
= control target key end

     0   :  { %8 = vsyncpa [#allocation3], 0  ;;  %s3261_s15 = smov [#allocation2]   ;;  %s3262_s17 = smov 64   ;;  %s3509_s0 = inlined_call_operand.vmem [shape: f32[2,3072], index: 0, kind: input, shape index: {}]   ;;  %s3510_s1 = inlined_call_operand.hbm [shape: bf16[3072,128], index: 1, kind: input, shape index: {}]   ;;  %s3511_s2 = inlined_call_operand.vmem [shape: f32[1,128], index: 2, kind: input, shape index: {}]   ;;  %s3512_s3 = inlined_call_operand.vmem [shape: bf16[2,128], index: 3, kind: output, shape index: {}]  }
   0x1   :  { %s15_s14 = sshll.u32 %s3510_s1, 4  ;;  %s17_s16 = sshll.u32 %s3261_s15, 4  ;;  %s16_s14 = int_to_ptr.hbm [resolvable:$true] %s15_s14  ;;  %s18_s16 = int_to_ptr.vmem [resolvable:$true] %s17_s16 }
   0x2   :  { %s3263_s18 = smov 4  }
   0x3   :  { %23 = dma.hbm_to_vmem [thread:$0]  %s16_s14, 24576, %s18_s16, [#allocation3], %s3262_s17, %s3262_s17, %s3263_s18  }
   0x4   :  { %3259 = dma.done.wait [#allocation3], 24576  }
   0x5   :  { %3260 = vsyncadd [#allocation3], 4294942720  ;;  %v3046_v0 = vld [vmem:[#allocation2 + $0x38] sm:$0xff]  ;;  %v3045_v4 = vld [vmem:[#allocation2 + $0x30] sm:$0xff]  ;;  %vm2185_vm0 = vcmask 1040384  }
   0x6   :  { %v3054_v1 = vld [vmem:[#allocation2 + $0x78] sm:$0xff]  ;;  %1841 = vmatpush.bf16.msra.mxu0 %v3046_v0  ;;  %v3053_v5 = vld [vmem:[#allocation2 + $0x70] sm:$0xff]  ;;  %v3044_v8 = vld [vmem:[#allocation2 + $0x28] sm:$0xff] }
   0x7   :  { %v3062_v2 = vld [vmem:[#allocation2 + $0xb8] sm:$0xff]  ;;  %1855 = vmatpush.bf16.msra.mxu1 %v3054_v1  ;;  %v3061_v6 = vld [vmem:[#allocation2 + $0xb0] sm:$0xff]  ;;  %v3052_v9 = vld [vmem:[#allocation2 + $0x68] sm:$0xff] }
   0x8   :  { %v3070_v3 = vld [vmem:[#allocation2 + $0xf8] sm:$0xff]  ;;  %1869 = vmatpush.bf16.msra.mxu2 %v3062_v2  ;;  %v3069_v7 = vld [vmem:[#allocation2 + $0xf0] sm:$0xff]  ;;  %v3060_v10 = vld [vmem:[#allocation2 + $0xa8] sm:$0xff] }
   0x9   :  { %1883 = vmatpush.bf16.msra.mxu3 %v3070_v3  ;;  %v3068_v11 = vld [vmem:[#allocation2 + $0xe8] sm:$0xff]  ;;  %v3043_v12 = vld [vmem:[#allocation2 + $0x20] sm:$0xff]  ;;  %v3042_v16 = vld [vmem:[#allocation2 + $0x18] sm:$0xff] }
   0xa   :  { %1842 = vmatpush.bf16.msra.mxu0 %v3045_v4  ;;  %v3051_v13 = vld [vmem:[#allocation2 + $0x60] sm:$0xff]  ;;  %v3050_v17 = vld [vmem:[#allocation2 + $0x58] sm:$0xff]  ;;  %v36_v21 = vld [vmem:[%s3509_s0 + $0x30] sm:$0xff] }
   0xb   :  { %1856 = vmatpush.bf16.msra.mxu1 %v3053_v5  ;;  %v3059_v14 = vld [vmem:[#allocation2 + $0xa0] sm:$0xff]  ;;  %v3058_v18 = vld [vmem:[#allocation2 + $0x98] sm:$0xff]  ;;  %v3041_v22 = vld [vmem:[#allocation2 + $0x10] sm:$0xff]  ;;  %128 = vst [vmem:[#allocation1 + $0x1] ss:$4 sm:$0xff] %v36_v21 }
   0xc   :  { %1870 = vmatpush.bf16.msra.mxu2 %v3061_v6  ;;  %v3067_v15 = vld [vmem:[#allocation2 + $0xe0] sm:$0xff]  ;;  %v3066_v19 = vld [vmem:[#allocation2 + $0xd8] sm:$0xff]  ;;  %v3049_v23 = vld [vmem:[#allocation2 + $0x50] sm:$0xff] }
   0xd   :  { %1884 = vmatpush.bf16.msra.mxu3 %v3069_v7  ;;  %v30_v20 = vld [vmem:[%s3509_s0] sm:$0xff]  ;;  %v3057_v25 = vld [vmem:[#allocation2 + $0x90] sm:$0xff]  ;;  %v48_v27 = vld [vmem:[%s3509_s0 + $0x90] sm:$0xff] }
   0xe   :  { %1843 = vmatpush.bf16.msra.mxu0 %v3044_v8  ;;  %126 = vst [vmem:[#allocation1] ss:$4 sm:$0xff] %v30_v20  ;;  %v42_v24 = vld [vmem:[%s3509_s0 + $0x60] sm:$0xff]  ;;  %v3065_v26 = vld [vmem:[#allocation2 + $0xd0] sm:$0xff]  ;;  %v3040_v28 = vld [vmem:[#allocation2 + $0x8] sm:$0xff] }
   0xf   :  { %1857 = vmatpush.bf16.msra.mxu1 %v3052_v9  ;;  %130 = vst [vmem:[#allocation1 + $0x2] ss:$4 sm:$0xff] %v42_v24  ;;  %v3048_v29 = vld [vmem:[#allocation2 + $0x48] sm:$0xff]  ;;  %v31_v30 = vld [vmem:[%s3509_s0 + $0x8] sm:$0xff]  ;;  %v37_v31 = vld [vmem:[%s3509_s0 + $0x38] sm:$0xff] }
  0x10   :  { %1871 = vmatpush.bf16.msra.mxu2 %v3060_v10  ;;  %132 = vst [vmem:[#allocation1 + $0x3] ss:$4 sm:$0xff] %v48_v27  ;;  %v43_v32 = vld [vmem:[%s3509_s0 + $0x68] sm:$0xff]  ;;  %v49_v33 = vld [vmem:[%s3509_s0 + $0x98] sm:$0xff]  ;;  %v3056_v34 = vld [vmem:[#allocation2 + $0x88] sm:$0xff] }
  0x11   :  { %1885 = vmatpush.bf16.msra.mxu3 %v3068_v11  ;;  %134 = vst [vmem:[#allocation1 + $0x20] ss:$4 sm:$0xff] %v31_v30  ;;  %v3064_v35 = vld [vmem:[#allocation2 + $0xc8] sm:$0xff]  ;;  %v3039_v36 = vld [vmem:[#allocation2] sm:$0xff]  ;;  %v3078_v40 = vld [vmem:[#allocation2 + $0x138] sm:$0xff] }
  0x12   :  { %1844 = vmatpush.bf16.msra.mxu0 %v3043_v12  ;;  %136 = vst [vmem:[#allocation1 + $0x21] ss:$4 sm:$0xff] %v37_v31  ;;  %v3047_v37 = vld [vmem:[#allocation2 + $0x40] sm:$0xff]  ;;  %v3086_v41 = vld [vmem:[#allocation2 + $0x178] sm:$0xff]  ;;  %v32_v42 = vld [vmem:[%s3509_s0 + $0x10] sm:$0xff] }
  0x13   :  { %1858 = vmatpush.bf16.msra.mxu1 %v3051_v13  ;;  %138 = vst [vmem:[#allocation1 + $0x22] ss:$4 sm:$0xff] %v43_v32  ;;  %v3055_v38 = vld [vmem:[#allocation2 + $0x80] sm:$0xff]  ;;  %v38_v43 = vld [vmem:[%s3509_s0 + $0x40] sm:$0xff]  ;;  %v44_v44 = vld [vmem:[%s3509_s0 + $0x70] sm:$0xff] }
  0x14   :  { %1872 = vmatpush.bf16.msra.mxu2 %v3059_v14  ;;  %v3063_v39 = vld [vmem:[#allocation2 + $0xc0] sm:$0xff]  ;;  %140 = vst [vmem:[#allocation1 + $0x23] ss:$4 sm:$0xff] %v49_v33  ;;  %v3094_v49 = vld [vmem:[#allocation2 + $0x1b8] sm:$0xff]  ;;  %v3077_v52 = vld [vmem:[#allocation2 + $0x130] sm:$0xff] }
  0x15   :  { %1886 = vmatpush.bf16.msra.mxu3 %v3067_v15  ;;  %v3102_v50 = vld [vmem:[#allocation2 + $0x1f8] sm:$0xff]  ;;  %v3085_v53 = vld [vmem:[#allocation2 + $0x170] sm:$0xff]  ;;  %v3076_v56 = vld [vmem:[#allocation2 + $0x128] sm:$0xff] }
  0x16   :  { %1845 = vmatpush.bf16.msra.mxu0 %v3042_v16  ;;  %v50_v51 = vld [vmem:[%s3509_s0 + $0xa0] sm:$0xff]  ;;  %v3093_v54 = vld [vmem:[#allocation2 + $0x1b0] sm:$0xff]  ;;  %v3084_v57 = vld [vmem:[#allocation2 + $0x168] sm:$0xff] }
  0x17   :  { %1859 = vmatpush.bf16.msra.mxu1 %v3050_v17  ;;  %v3320_v45 = vld.sshfl [vmem:[#allocation1] sm:$0xff pattern:$0x73625140]  ;;  %v3322_v46 = vld.sshfl [vmem:[#allocation1 + $0x8] sm:$0xff pattern:$0x73625140] }
  0x18   :  { %1873 = vmatpush.bf16.msra.mxu2 %v3058_v18  ;;  %v3324_v47 = vld.sshfl [vmem:[#allocation1 + $0x10] sm:$0xff pattern:$0x73625140]  ;;  %v3326_v48 = vld.sshfl [vmem:[#allocation1 + $0x18] sm:$0xff pattern:$0x73625140] }
  0x19   :  { %1887 = vmatpush.bf16.msra.mxu3 %v3066_v19  ;;  %149 = vst [vmem:[#allocation1] ss:$4 sm:$0xff] %v32_v42  ;;  %v3101_v55 = vld [vmem:[#allocation2 + $0x1f0] sm:$0xff]  ;;  %v3092_v58 = vld [vmem:[#allocation2 + $0x1a8] sm:$0xff]  ;;  %v3075_v60 = vld [vmem:[#allocation2 + $0x120] sm:$0xff] }
  0x1a   :  { %1846 = vmatpush.bf16.msra.mxu0 %v3041_v22  ;;  %150 = vst [vmem:[#allocation1 + $0x1] ss:$4 sm:$0xff] %v38_v43  ;;  %v3100_v59 = vld [vmem:[#allocation2 + $0x1e8] sm:$0xff]  ;;  %v3083_v61 = vld [vmem:[#allocation2 + $0x160] sm:$0xff]  ;;  %v34_v62 = vld [vmem:[%s3509_s0 + $0x20] sm:$0xff] }
  0x1b   :  { %1860 = vmatpush.bf16.msra.mxu1 %v3049_v23  ;;  %151 = vst [vmem:[#allocation1 + $0x2] ss:$4 sm:$0xff] %v44_v44  ;;  %v40_v63 = vld [vmem:[%s3509_s0 + $0x50] sm:$0xff]  ;;  %v46_v0 = vld [vmem:[%s3509_s0 + $0x80] sm:$0xff]  ;;  %v3091_v1 = vld [vmem:[#allocation2 + $0x1a0] sm:$0xff] }
  0x1c   :  { %1874 = vmatpush.bf16.msra.mxu2 %v3057_v25  ;;  %152 = vst [vmem:[#allocation1 + $0x3] ss:$4 sm:$0xff] %v50_v51  ;;  %v3099_v6 = vld [vmem:[#allocation2 + $0x1e0] sm:$0xff]  ;;  %v52_v7 = vld [vmem:[%s3509_s0 + $0xb0] sm:$0xff]  ;;  %v33_v8 = vld [vmem:[%s3509_s0 + $0x18] sm:$0xff] }
  0x1d   :  { %1888 = vmatpush.bf16.msra.mxu3 %v3065_v26  ;;  %v39_v9 = vld [vmem:[%s3509_s0 + $0x48] sm:$0xff]  ;;  %v3357_v10 = vld.sshfl [vmem:[#allocation1 + $0x20] sm:$0xff pattern:$0x73625140]  ;;  %v45_v12 = vld [vmem:[%s3509_s0 + $0x78] sm:$0xff] }
  0x1e   :  { %1847 = vmatpush.bf16.msra.mxu0 %v3040_v28  ;;  %v3074_v11 = vld [vmem:[#allocation2 + $0x118] sm:$0xff]  ;;  %v3362_v13 = vld.sshfl [vmem:[#allocation1 + $0x28] sm:$0xff pattern:$0x73625140]  ;;  %v3073_v21 = vld [vmem:[#allocation2 + $0x110] sm:$0xff] }
  0x1f   :  { %1861 = vmatpush.bf16.msra.mxu1 %v3048_v29  ;;  %v3082_v14 = vld [vmem:[#allocation2 + $0x158] sm:$0xff]  ;;  %v3364_v15 = vld.sshfl [vmem:[#allocation1 + $0x30] sm:$0xff pattern:$0x73625140]  ;;  %v51_v19 = vld [vmem:[%s3509_s0 + $0xa8] sm:$0xff] }
  0x20   :  { %1875 = vmatpush.bf16.msra.mxu2 %v3056_v34  ;;  %v3090_v16 = vld [vmem:[#allocation2 + $0x198] sm:$0xff]  ;;  %v3366_v18 = vld.sshfl [vmem:[#allocation1 + $0x38] sm:$0xff pattern:$0x73625140]  ;;  %v60_v23 = vld [vmem:[%s3509_s0 + $0xf0] sm:$0xff] }
  0x21   :  { %1889 = vmatpush.bf16.msra.mxu3 %v3064_v35  ;;  %v3098_v17 = vld [vmem:[#allocation2 + $0x1d8] sm:$0xff]  ;;  %153 = vst [vmem:[#allocation1 + $0x20] ss:$4 sm:$0xff] %v33_v8  ;;  %v3081_v22 = vld [vmem:[#allocation2 + $0x150] sm:$0xff]  ;;  %v3072_v27 = vld [vmem:[#allocation2 + $0x108] sm:$0xff] }
  0x22   :  { %1848 = vmatpush.bf16.msra.mxu0 %v3039_v36  ;;  %154 = vst [vmem:[#allocation1 + $0x21] ss:$4 sm:$0xff] %v39_v9  ;;  %v54_v20 = vld [vmem:[%s3509_s0 + $0xc0] sm:$0xff]  ;;  %v3089_v24 = vld [vmem:[#allocation2 + $0x190] sm:$0xff]  ;;  %v3080_v28 = vld [vmem:[#allocation2 + $0x148] sm:$0xff] }
  0x23   :  { %1862 = vmatpush.bf16.msra.mxu1 %v3047_v37  ;;  %v3340_v2 = vld.sshfl [vmem:[#allocation1] sm:$0xff pattern:$0x73625140]  ;;  %v3342_v3 = vld.sshfl [vmem:[#allocation1 + $0x8] sm:$0xff pattern:$0x73625140] }
  0x24   :  { %1876 = vmatpush.bf16.msra.mxu2 %v3055_v38  ;;  %v3344_v4 = vld.sshfl [vmem:[#allocation1 + $0x10] sm:$0xff pattern:$0x73625140]  ;;  %v3346_v5 = vld.sshfl [vmem:[#allocation1 + $0x18] sm:$0xff pattern:$0x73625140] }
  0x25   :  { %1890 = vmatpush.bf16.msra.mxu3 %v3063_v39  ;;  %165 = vst [vmem:[#allocation1] ss:$4 sm:$0xff] %v34_v62  ;;  %v3097_v25 = vld [vmem:[#allocation2 + $0x1d0] sm:$0xff]  ;;  %v66_v26 = vld [vmem:[%s3509_s0 + $0x120] sm:$0xff]  ;;  %v72_v33 = vld [vmem:[%s3509_s0 + $0x150] sm:$0xff] }
  0x26   :  { %1897 = vmatpush.bf16.msrb.mxu0 %v3078_v40  ;;  %166 = vst [vmem:[#allocation1 + $0x1] ss:$4 sm:$0xff] %v40_v63  ;;  %v3088_v34 = vld [vmem:[#allocation2 + $0x188] sm:$0xff]  ;;  %v35_v36 = vld [vmem:[%s3509_s0 + $0x28] sm:$0xff]  ;;  %v41_v40 = vld [vmem:[%s3509_s0 + $0x58] sm:$0xff] }
  0x27   :  { %1911 = vmatpush.bf16.msrb.mxu1 %v3086_v41  ;;  %167 = vst [vmem:[#allocation1 + $0x2] ss:$4 sm:$0xff] %v46_v0  ;;  %v3096_v35 = vld [vmem:[#allocation2 + $0x1c8] sm:$0xff]  ;;  %v3071_v37 = vld [vmem:[#allocation2 + $0x100] sm:$0xff]  ;;  %v53_v51 = vld [vmem:[%s3509_s0 + $0xb8] sm:$0xff] }
  0x28   :  { %1925 = vmatpush.bf16.msrb.mxu2 %v3094_v49  ;;  %168 = vst [vmem:[#allocation1 + $0x3] ss:$4 sm:$0xff] %v52_v7  ;;  %v3079_v38 = vld [vmem:[#allocation2 + $0x140] sm:$0xff]  ;;  %v3126_v62 = vld [vmem:[#allocation2 + $0x2b8] sm:$0xff] }
  0x29   :  { %1939 = vmatpush.bf16.msrb.mxu3 %v3102_v50  ;;  %155 = vst [vmem:[#allocation1 + $0x22] ss:$4 sm:$0xff] %v45_v12  ;;  %v3087_v39 = vld [vmem:[#allocation2 + $0x180] sm:$0xff]  ;;  %v3134_v63 = vld [vmem:[#allocation2 + $0x2f8] sm:$0xff]  ;;  %v73_v12 = vld [vmem:[%s3509_s0 + $0x158] sm:$0xff] }
  0x2a   :  { %1898 = vmatpush.bf16.msrb.mxu0 %v3077_v52  ;;  %156 = vst [vmem:[#allocation1 + $0x23] ss:$4 sm:$0xff] %v51_v19  ;;  %v3095_v41 = vld [vmem:[#allocation2 + $0x1c0] sm:$0xff]  ;;  %v3110_v52 = vld [vmem:[#allocation2 + $0x238] sm:$0xff]  ;;  %v3124_v19 = vld [vmem:[#allocation2 + $0x2a8] sm:$0xff] }
  0x2b   :  { %1912 = vmatpush.bf16.msrb.mxu1 %v3085_v53  ;;  %v47_v49 = vld [vmem:[%s3509_s0 + $0x88] sm:$0xff]  ;;  %v3118_v53 = vld [vmem:[#allocation2 + $0x278] sm:$0xff] }
  0x2c   :  { %1926 = vmatpush.bf16.msrb.mxu2 %v3093_v54  ;;  %v55_v0 = vld [vmem:[%s3509_s0 + $0xc8] sm:$0xff] }
  0x2d   :  { %1940 = vmatpush.bf16.msrb.mxu3 %v3101_v55 }
  0x2e   :  { %1899 = vmatpush.bf16.msrb.mxu0 %v3076_v56 }
  0x2f   :  { %1913 = vmatpush.bf16.msrb.mxu1 %v3084_v57  ;;  %v3380_v29 = vld.sshfl [vmem:[#allocation1] sm:$0xff pattern:$0x73625140]  ;;  %v3382_v30 = vld.sshfl [vmem:[#allocation1 + $0x8] sm:$0xff pattern:$0x73625140] }
  0x30   :  { %1927 = vmatpush.bf16.msrb.mxu2 %v3092_v58  ;;  %v3384_v31 = vld.sshfl [vmem:[#allocation1 + $0x10] sm:$0xff pattern:$0x73625140]  ;;  %v3386_v32 = vld.sshfl [vmem:[#allocation1 + $0x18] sm:$0xff pattern:$0x73625140] }
  0x31   :  { %1941 = vmatpush.bf16.msrb.mxu3 %v3100_v59  ;;  %181 = vst [vmem:[#allocation1] ss:$4 sm:$0xff] %v54_v20  ;;  %v3397_v42 = vld.sshfl [vmem:[#allocation1 + $0x20] sm:$0xff pattern:$0x73625140]  ;;  %v3132_v20 = vld [vmem:[#allocation2 + $0x2e8] sm:$0xff] }
  0x32   :  { %1900 = vmatpush.bf16.msrb.mxu0 %v3075_v60  ;;  %182 = vst [vmem:[#allocation1 + $0x1] ss:$4 sm:$0xff] %v60_v23  ;;  %v3399_v43 = vld.sshfl [vmem:[#allocation1 + $0x28] sm:$0xff pattern:$0x73625140]  ;;  %v74_v23 = vld [vmem:[%s3509_s0 + $0x160] sm:$0xff] }
  0x33   :  { %1914 = vmatpush.bf16.msrb.mxu1 %v3083_v61  ;;  %183 = vst [vmem:[#allocation1 + $0x2] ss:$4 sm:$0xff] %v66_v26  ;;  %v3401_v44 = vld.sshfl [vmem:[#allocation1 + $0x30] sm:$0xff pattern:$0x73625140]  ;;  %v3123_v26 = vld [vmem:[#allocation2 + $0x2a0] sm:$0xff] }
  0x34   :  { %1928 = vmatpush.bf16.msrb.mxu2 %v3091_v1  ;;  %184 = vst [vmem:[#allocation1 + $0x3] ss:$4 sm:$0xff] %v72_v33  ;;  %v3406_v50 = vld.sshfl [vmem:[#allocation1 + $0x38] sm:$0xff pattern:$0x73625140]  ;;  %v3114_v33 = vld [vmem:[#allocation2 + $0x258] sm:$0xff] }
  0x35   :  { %1942 = vmatpush.bf16.msrb.mxu3 %v3099_v6  ;;  %169 = vst [vmem:[#allocation1 + $0x20] ss:$4 sm:$0xff] %v35_v36  ;;  %v3125_v1 = vld [vmem:[#allocation2 + $0x2b0] sm:$0xff] }
  0x36   :  { %1901 = vmatpush.bf16.msrb.mxu0 %v3074_v11  ;;  %170 = vst [vmem:[#allocation1 + $0x21] ss:$4 sm:$0xff] %v41_v40  ;;  %v3133_v6 = vld [vmem:[#allocation2 + $0x2f0] sm:$0xff] }
  0x37   :  { %1915 = vmatpush.bf16.msrb.mxu1 %v3082_v14  ;;  %171 = vst [vmem:[#allocation1 + $0x22] ss:$4 sm:$0xff] %v47_v49  ;;  %v3108_v14 = vld [vmem:[#allocation2 + $0x228] sm:$0xff]  ;;  %v3122_v49 = vld [vmem:[#allocation2 + $0x298] sm:$0xff] }
  0x38   :  { %1929 = vmatpush.bf16.msrb.mxu2 %v3090_v16  ;;  %172 = vst [vmem:[#allocation1 + $0x23] ss:$4 sm:$0xff] %v53_v51  ;;  %v3116_v16 = vld [vmem:[#allocation2 + $0x268] sm:$0xff]  ;;  %v3130_v51 = vld [vmem:[#allocation2 + $0x2d8] sm:$0xff] }
  0x39   :  { %1943 = vmatpush.bf16.msrb.mxu3 %v3098_v17  ;;  %v56_v17 = vld [vmem:[%s3509_s0 + $0xd0] sm:$0xff] }
  0x3a   :  { %1902 = vmatpush.bf16.msrb.mxu0 %v3073_v21  ;;  %v62_v21 = vld [vmem:[%s3509_s0 + $0x100] sm:$0xff] }
  0x3b   :  { %1916 = vmatpush.bf16.msrb.mxu1 %v3081_v22  ;;  %v189_v54 = vld.sshfl [vmem:[#allocation1] sm:$0xff pattern:$0x73625140]  ;;  %v191_v55 = vld.sshfl [vmem:[#allocation1 + $0x10] sm:$0xff pattern:$0x73625140] }
  0x3c   :  { %1930 = vmatpush.bf16.msrb.mxu2 %v3089_v24  ;;  %v277_v56 = vpack.c.bf16 %v189_v54, %v3320_v45  ;;  %v279_v57 = vpack.c.bf16 %v191_v55, %v3324_v47  ;;  %v190_v58 = vld.sshfl [vmem:[#allocation1 + $0x8] sm:$0xff pattern:$0x73625140]  ;;  %v192_v59 = vld.sshfl [vmem:[#allocation1 + $0x18] sm:$0xff pattern:$0x73625140] }
  0x3d   :  { %1944 = vmatpush.bf16.msrb.mxu3 %v3097_v25  ;;  %v278_v60 = vpack.c.bf16 %v190_v58, %v3322_v46  ;;  %v280_v61 = vpack.c.bf16 %v192_v59, %v3326_v48  ;;  %v61_v45 = vld [vmem:[%s3509_s0 + $0xf8] sm:$0xff]  ;;  %v67_v46 = vld [vmem:[%s3509_s0 + $0x128] sm:$0xff]  ;;  %v68_v22 = vld [vmem:[%s3509_s0 + $0x130] sm:$0xff]  ;;  %197 = vst [vmem:[#allocation1] ss:$4 sm:$0xff] %v56_v17 }
  0x3e   :  { %1903 = vmatpush.bf16.msrb.mxu0 %v3072_v27  ;;  %1877 = vmatmul.bf16.vlgmr.msra.gmra.mxu2 %v279_v57  ;;  %v3109_v47 = vld [vmem:[#allocation2 + $0x230] sm:$0xff]  ;;  %v3107_v24 = vld [vmem:[#allocation2 + $0x220] sm:$0xff]  ;;  %198 = vst [vmem:[#allocation1 + $0x1] ss:$4 sm:$0xff] %v62_v21  ;;  %v3104_v54 = vld [vmem:[#allocation2 + $0x208] sm:$0xff] }
  0x3f   :  { %1917 = vmatpush.bf16.msrb.mxu1 %v3080_v28  ;;  %1849 = vmatmul.bf16.vlgmr.msra.gmra.mxu0 %v277_v56  ;;  %v3117_v48 = vld [vmem:[#allocation2 + $0x270] sm:$0xff]  ;;  %v3424_v7 = vld.sshfl [vmem:[#allocation1 + $0x20] sm:$0xff pattern:$0x73625140]  ;;  %v3115_v25 = vld [vmem:[#allocation2 + $0x260] sm:$0xff] }
  0x40   :  { %1931 = vmatpush.bf16.msrb.mxu2 %v3088_v34  ;;  %1863 = vmatmul.bf16.vlgmr.msra.gmra.mxu1 %v278_v60  ;;  %v3426_v8 = vld.sshfl [vmem:[#allocation1 + $0x28] sm:$0xff pattern:$0x73625140]  ;;  %v3428_v9 = vld.sshfl [vmem:[#allocation1 + $0x30] sm:$0xff pattern:$0x73625140] }
  0x41   :  { %1945 = vmatpush.bf16.msrb.mxu3 %v3096_v35  ;;  %v3430_v11 = vld.sshfl [vmem:[#allocation1 + $0x38] sm:$0xff pattern:$0x73625140]  ;;  %v3131_v27 = vld [vmem:[#allocation2 + $0x2e0] sm:$0xff]  ;;  %199 = vst [vmem:[#allocation1 + $0x2] ss:$4 sm:$0xff] %v68_v22 }
  0x42   :  { %1904 = vmatpush.bf16.msrb.mxu0 %v3071_v37  ;;  %1891 = vmatmul.bf16.vlgmr.msra.gmra.mxu3 %v280_v61  ;;  %185 = vst [vmem:[#allocation1 + $0x20] ss:$4 sm:$0xff] %v55_v0  ;;  %v3106_v28 = vld [vmem:[#allocation2 + $0x218] sm:$0xff]  ;;  %v3128_v55 = vld [vmem:[#allocation2 + $0x2c8] sm:$0xff]  ;;  %v3103_v56 = vld [vmem:[#allocation2 + $0x200] sm:$0xff] }
  0x43   :  { %1918 = vmatpush.bf16.msrb.mxu1 %v3079_v38  ;;  %186 = vst [vmem:[#allocation1 + $0x21] ss:$4 sm:$0xff] %v61_v45  ;;  %v3111_v57 = vld [vmem:[#allocation2 + $0x240] sm:$0xff]  ;;  %v3142_v60 = vld [vmem:[#allocation2 + $0x338] sm:$0xff]  ;;  %v3148_v21 = vld [vmem:[#allocation2 + $0x368] sm:$0xff] }
  0x44   :  { %1932 = vmatpush.bf16.msrb.mxu2 %v3087_v39  ;;  %187 = vst [vmem:[#allocation1 + $0x22] ss:$4 sm:$0xff] %v67_v46  ;;  %v3119_v58 = vld [vmem:[#allocation2 + $0x280] sm:$0xff]  ;;  %v3150_v61 = vld [vmem:[#allocation2 + $0x378] sm:$0xff]  ;;  %v3156_v22 = vld [vmem:[#allocation2 + $0x3a8] sm:$0xff] }
  0x45   :  { %1946 = vmatpush.bf16.msrb.mxu3 %v3095_v41  ;;  %188 = vst [vmem:[#allocation1 + $0x23] ss:$4 sm:$0xff] %v73_v12  ;;  %v3127_v59 = vld [vmem:[#allocation2 + $0x2c0] sm:$0xff]  ;;  %v3166_v46 = vld [vmem:[#allocation2 + $0x3f8] sm:$0xff] }
  0x46   :  { %1953 = vmatpush.bf16.msra.mxu0 %v3110_v52  ;;  %200 = vst [vmem:[#allocation1 + $0x3] ss:$4 sm:$0xff] %v74_v23  ;;  %v3105_v52 = vld [vmem:[#allocation2 + $0x210] sm:$0xff]  ;;  %v63_v17 = vld [vmem:[%s3509_s0 + $0x108] sm:$0xff]  ;;  %v3164_v23 = vld [vmem:[#allocation2 + $0x3e8] sm:$0xff] }
  0x47   :  { %1967 = vmatpush.bf16.msra.mxu1 %v3118_v53  ;;  %v3113_v53 = vld [vmem:[#allocation2 + $0x250] sm:$0xff] }
  0x48   :  { %1981 = vmatpush.bf16.msra.mxu2 %v3126_v62 }
  0x49   :  { %1995 = vmatpush.bf16.msra.mxu3 %v3134_v63 }
  0x4a   :  { %1954 = vmatpush.bf16.msra.mxu0 %v3109_v47  ;;  %v3158_v47 = vld [vmem:[#allocation2 + $0x3b8] sm:$0xff] }
  0x4b   :  { %1968 = vmatpush.bf16.msra.mxu1 %v3117_v48 }
  0x4c   :  { %1982 = vmatpush.bf16.msra.mxu2 %v3125_v1  ;;  %v193_v34 = vld.sshfl [vmem:[#allocation1 + $0x20] sm:$0xff pattern:$0x73625140]  ;;  %v195_v35 = vld.sshfl [vmem:[#allocation1 + $0x30] sm:$0xff pattern:$0x73625140] }
  0x4d   :  { %1996 = vmatpush.bf16.msra.mxu3 %v3133_v6  ;;  %v281_v36 = vpack.c.bf16 %v193_v34, %v3357_v10  ;;  %v283_v37 = vpack.c.bf16 %v195_v35, %v3364_v15  ;;  %v194_v38 = vld.sshfl [vmem:[#allocation1 + $0x28] sm:$0xff pattern:$0x73625140]  ;;  %v196_v39 = vld.sshfl [vmem:[#allocation1 + $0x38] sm:$0xff pattern:$0x73625140] }
  0x4e   :  { %1955 = vmatpush.bf16.msra.mxu0 %v3108_v14  ;;  %v282_v40 = vpack.c.bf16 %v194_v38, %v3362_v13  ;;  %v284_v41 = vpack.c.bf16 %v196_v39, %v3366_v18  ;;  %v3121_v10 = vld [vmem:[#allocation2 + $0x290] sm:$0xff]  ;;  %v3112_v13 = vld [vmem:[#allocation2 + $0x248] sm:$0xff]  ;;  %v205_v62 = vld.sshfl [vmem:[#allocation1] sm:$0xff pattern:$0x73625140] }
  0x4f   :  { %1969 = vmatpush.bf16.msra.mxu1 %v3116_v16  ;;  %1905 = vmatmul.bf16.vlgmr.msrb.gmra.mxu0 %v281_v36  ;;  %v3129_v15 = vld [vmem:[#allocation2 + $0x2d0] sm:$0xff]  ;;  %v3120_v18 = vld [vmem:[#allocation2 + $0x288] sm:$0xff]  ;;  %v206_v0 = vld.sshfl [vmem:[#allocation1 + $0x8] sm:$0xff pattern:$0x73625140]  ;;  %v285_v48 = vpack.c.bf16 %v205_v62, %v3340_v2 }
  0x50   :  { %1983 = vmatpush.bf16.msra.mxu2 %v3124_v19  ;;  %1919 = vmatmul.bf16.vlgmr.msrb.gmra.mxu1 %v282_v40  ;;  %v207_v63 = vld.sshfl [vmem:[#allocation1 + $0x10] sm:$0xff pattern:$0x73625140]  ;;  %v208_v45 = vld.sshfl [vmem:[#allocation1 + $0x18] sm:$0xff pattern:$0x73625140]  ;;  %v286_v6 = vpack.c.bf16 %v206_v0, %v3342_v3 }
  0x51   :  { %1997 = vmatpush.bf16.msra.mxu3 %v3132_v20  ;;  %1933 = vmatmul.bf16.vlgmr.msrb.gmra.mxu2 %v283_v37  ;;  %v287_v1 = vpack.c.bf16 %v207_v63, %v3344_v4  ;;  %v288_v12 = vpack.c.bf16 %v208_v45, %v3346_v5  ;;  %v3141_v14 = vld [vmem:[#allocation2 + $0x330] sm:$0xff]  ;;  %v75_v3 = vld [vmem:[%s3509_s0 + $0x168] sm:$0xff]  ;;  %202 = vst [vmem:[#allocation1 + $0x21] ss:$4 sm:$0xff] %v63_v17  ;;  %v3140_v20 = vld [vmem:[#allocation2 + $0x328] sm:$0xff] }
  0x52   :  { %1956 = vmatpush.bf16.msra.mxu0 %v3107_v24  ;;  %1947 = vmatmul.bf16.vlgmr.msrb.gmra.mxu3 %v284_v41  ;;  %v57_v16 = vld [vmem:[%s3509_s0 + $0xd8] sm:$0xff]  ;;  %204 = vst [vmem:[#allocation1 + $0x23] ss:$4 sm:$0xff] %v75_v3  ;;  %v3139_v24 = vld [vmem:[#allocation2 + $0x320] sm:$0xff]  ;;  %v3154_v34 = vld [vmem:[#allocation2 + $0x398] sm:$0xff] }
  0x53   :  { %1970 = vmatpush.bf16.msra.mxu1 %v3115_v25  ;;  %v3149_v2 = vld [vmem:[#allocation2 + $0x370] sm:$0xff]  ;;  %201 = vst [vmem:[#allocation1 + $0x20] ss:$4 sm:$0xff] %v57_v16  ;;  %v3147_v25 = vld [vmem:[#allocation2 + $0x360] sm:$0xff]  ;;  %v3162_v35 = vld [vmem:[#allocation2 + $0x3d8] sm:$0xff] }
  0x54   :  { %1984 = vmatpush.bf16.msra.mxu2 %v3123_v26  ;;  %v69_v4 = vld [vmem:[%s3509_s0 + $0x138] sm:$0xff]  ;;  %v3155_v26 = vld [vmem:[#allocation2 + $0x3a0] sm:$0xff]  ;;  %v3136_v40 = vld [vmem:[#allocation2 + $0x308] sm:$0xff] }
  0x55   :  { %1998 = vmatpush.bf16.msra.mxu3 %v3131_v27  ;;  %v3157_v5 = vld [vmem:[#allocation2 + $0x3b0] sm:$0xff]  ;;  %203 = vst [vmem:[#allocation1 + $0x22] ss:$4 sm:$0xff] %v69_v4  ;;  %v3163_v27 = vld [vmem:[#allocation2 + $0x3e0] sm:$0xff]  ;;  %v3144_v41 = vld [vmem:[#allocation2 + $0x348] sm:$0xff] }
  0x56   :  { %1957 = vmatpush.bf16.msra.mxu0 %v3106_v28  ;;  %v3165_v19 = vld [vmem:[#allocation2 + $0x3f0] sm:$0xff]  ;;  %v3138_v28 = vld [vmem:[#allocation2 + $0x318] sm:$0xff]  ;;  %v64_v45 = vld [vmem:[%s3509_s0 + $0x110] sm:$0xff] }
  0x57   :  { %1971 = vmatpush.bf16.msra.mxu1 %v3114_v33  ;;  %v3146_v33 = vld [vmem:[#allocation2 + $0x358] sm:$0xff]  ;;  %v3137_v36 = vld [vmem:[#allocation2 + $0x310] sm:$0xff]  ;;  %214 = vst [vmem:[#allocation1 + $0x1] ss:$4 sm:$0xff] %v64_v45  ;;  %v3179_v16 = vld [vmem:[#allocation2 + $0x460] sm:$0xff] }
  0x58   :  { %1985 = vmatpush.bf16.msra.mxu2 %v3122_v49  ;;  %v3145_v37 = vld [vmem:[#allocation2 + $0x350] sm:$0xff]  ;;  %v3152_v49 = vld [vmem:[#allocation2 + $0x388] sm:$0xff]  ;;  %v58_v62 = vld [vmem:[%s3509_s0 + $0xe0] sm:$0xff] }
  0x59   :  { %1999 = vmatpush.bf16.msra.mxu3 %v3130_v51  ;;  %v3153_v38 = vld [vmem:[#allocation2 + $0x390] sm:$0xff]  ;;  %v3160_v51 = vld [vmem:[#allocation2 + $0x3c8] sm:$0xff]  ;;  %213 = vst [vmem:[#allocation1] ss:$4 sm:$0xff] %v58_v62  ;;  %v3187_v17 = vld [vmem:[#allocation2 + $0x4a0] sm:$0xff] }
  0x5a   :  { %1958 = vmatpush.bf16.msra.mxu0 %v3105_v52  ;;  %v3161_v39 = vld [vmem:[#allocation2 + $0x3d0] sm:$0xff]  ;;  %v3135_v52 = vld [vmem:[#allocation2 + $0x300] sm:$0xff]  ;;  %v3170_v4 = vld [vmem:[#allocation2 + $0x418] sm:$0xff] }
  0x5b   :  { %1972 = vmatpush.bf16.msra.mxu1 %v3113_v53  ;;  %v3143_v53 = vld [vmem:[#allocation2 + $0x340] sm:$0xff]  ;;  %v3178_v3 = vld [vmem:[#allocation2 + $0x458] sm:$0xff] }
  0x5c   :  { %1986 = vmatpush.bf16.msra.mxu2 %v3121_v10  ;;  %v3151_v10 = vld [vmem:[#allocation2 + $0x380] sm:$0xff]  ;;  %v3210_v45 = vld [vmem:[#allocation2 + $0x558] sm:$0xff] }
  0x5d   :  { %2000 = vmatpush.bf16.msra.mxu3 %v3129_v15  ;;  %v3159_v15 = vld [vmem:[#allocation2 + $0x3c0] sm:$0xff] }
  0x5e   :  { %1959 = vmatpush.bf16.msra.mxu0 %v3104_v54  ;;  %v3174_v54 = vld [vmem:[#allocation2 + $0x438] sm:$0xff]  ;;  %v3219_v62 = vld [vmem:[#allocation2 + $0x5a0] sm:$0xff] }
  0x5f   :  { %1973 = vmatpush.bf16.msra.mxu1 %v3112_v13  ;;  %v3182_v13 = vld [vmem:[#allocation2 + $0x478] sm:$0xff] }
  0x60   :  { %1987 = vmatpush.bf16.msra.mxu2 %v3120_v18  ;;  %v209_v18 = vld.sshfl [vmem:[#allocation1 + $0x20] sm:$0xff pattern:$0x73625140] }
  0x61   :  { %2001 = vmatpush.bf16.msra.mxu3 %v3128_v55  ;;  %v211_v55 = vld.sshfl [vmem:[#allocation1 + $0x30] sm:$0xff pattern:$0x73625140] }
  0x62   :  { %1960 = vmatpush.bf16.msra.mxu0 %v3103_v56  ;;  %v210_v56 = vld.sshfl [vmem:[#allocation1 + $0x28] sm:$0xff pattern:$0x73625140] }
  0x63   :  { %1974 = vmatpush.bf16.msra.mxu1 %v3111_v57  ;;  %v212_v57 = vld.sshfl [vmem:[#allocation1 + $0x38] sm:$0xff pattern:$0x73625140]  ;;  %v290_v63 = vpack.c.bf16 %v210_v56, %v3399_v43 }
  0x64   :  { %1988 = vmatpush.bf16.msra.mxu2 %v3119_v58  ;;  %v3190_v58 = vld [vmem:[#allocation2 + $0x4b8] sm:$0xff]  ;;  %v292_v0 = vpack.c.bf16 %v212_v57, %v3406_v50  ;;  %v3189_v43 = vld [vmem:[#allocation2 + $0x4b0] sm:$0xff] }
  0x65   :  { %2002 = vmatpush.bf16.msra.mxu3 %v3127_v59  ;;  %1961 = vmatmul.bf16.vlgmr.msra.gmra.mxu0 %v285_v48  ;;  %v3198_v59 = vld [vmem:[#allocation2 + $0x4f8] sm:$0xff]  ;;  %v3197_v50 = vld [vmem:[#allocation2 + $0x4f0] sm:$0xff]  ;;  %v3172_v48 = vld [vmem:[#allocation2 + $0x428] sm:$0xff] }
  0x66   :  { %2009 = vmatpush.bf16.msrb.mxu0 %v3142_v60  ;;  %1975 = vmatmul.bf16.vlgmr.msra.gmra.mxu1 %v286_v6  ;;  %v289_v60 = vpack.c.bf16 %v209_v18, %v3397_v42  ;;  %v70_v42 = vld [vmem:[%s3509_s0 + $0x140] sm:$0xff]  ;;  %v3188_v6 = vld [vmem:[#allocation2 + $0x4a8] sm:$0xff]  ;;  %v3205_v56 = vld [vmem:[#allocation2 + $0x530] sm:$0xff] }
  0x67   :  { %2023 = vmatpush.bf16.msrb.mxu1 %v3150_v61  ;;  %1989 = vmatmul.bf16.vlgmr.msra.gmra.mxu2 %v287_v1  ;;  %v291_v61 = vpack.c.bf16 %v211_v55, %v3401_v44  ;;  %v3173_v44 = vld [vmem:[#allocation2 + $0x430] sm:$0xff]  ;;  %215 = vst [vmem:[#allocation1 + $0x2] ss:$4 sm:$0xff] %v70_v42  ;;  %v3180_v1 = vld [vmem:[#allocation2 + $0x468] sm:$0xff]  ;;  %v3218_v42 = vld [vmem:[#allocation2 + $0x598] sm:$0xff] }
  0x68   :  { %2037 = vmatpush.bf16.msrb.mxu2 %v3158_v47  ;;  %2003 = vmatmul.bf16.vlgmr.msra.gmra.mxu3 %v288_v12  ;;  %v3181_v47 = vld [vmem:[#allocation2 + $0x470] sm:$0xff]  ;;  %v3196_v12 = vld [vmem:[#allocation2 + $0x4e8] sm:$0xff] }
  0x69   :  { %2051 = vmatpush.bf16.msrb.mxu3 %v3166_v46  ;;  %v76_v46 = vld [vmem:[%s3509_s0 + $0x170] sm:$0xff]  ;;  %v3213_v57 = vld [vmem:[#allocation2 + $0x570] sm:$0xff] }
  0x6a   :  { %2010 = vmatpush.bf16.msrb.mxu0 %v3141_v14  ;;  %216 = vst [vmem:[#allocation1 + $0x3] ss:$4 sm:$0xff] %v76_v46  ;;  %v3171_v14 = vld [vmem:[#allocation2 + $0x420] sm:$0xff]  ;;  %v3209_v46 = vld [vmem:[#allocation2 + $0x550] sm:$0xff] }
  0x6b   :  { %2024 = vmatpush.bf16.msrb.mxu1 %v3149_v2  ;;  %v3195_v2 = vld [vmem:[#allocation2 + $0x4e0] sm:$0xff] }
  0x6c   :  { %2038 = vmatpush.bf16.msrb.mxu2 %v3157_v5  ;;  %v3186_v5 = vld [vmem:[#allocation2 + $0x498] sm:$0xff] }
  0x6d   :  { %2052 = vmatpush.bf16.msrb.mxu3 %v3165_v19  ;;  %v3194_v19 = vld [vmem:[#allocation2 + $0x4d8] sm:$0xff] }
  0x6e   :  { %2011 = vmatpush.bf16.msrb.mxu0 %v3140_v20  ;;  %v3169_v20 = vld [vmem:[#allocation2 + $0x410] sm:$0xff] }
  0x6f   :  { %2025 = vmatpush.bf16.msrb.mxu1 %v3148_v21  ;;  %v3177_v21 = vld [vmem:[#allocation2 + $0x450] sm:$0xff] }
  0x70   :  { %2039 = vmatpush.bf16.msrb.mxu2 %v3156_v22  ;;  %v3185_v22 = vld [vmem:[#allocation2 + $0x490] sm:$0xff] }
  0x71   :  { %2053 = vmatpush.bf16.msrb.mxu3 %v3164_v23  ;;  %v3193_v23 = vld [vmem:[#allocation2 + $0x4d0] sm:$0xff] }
  0x72   :  { %2012 = vmatpush.bf16.msrb.mxu0 %v3139_v24  ;;  %v3168_v24 = vld [vmem:[#allocation2 + $0x408] sm:$0xff] }
  0x73   :  { %2026 = vmatpush.bf16.msrb.mxu1 %v3147_v25  ;;  %v3176_v25 = vld [vmem:[#allocation2 + $0x448] sm:$0xff] }
  0x74   :  { %2040 = vmatpush.bf16.msrb.mxu2 %v3155_v26  ;;  %v3184_v26 = vld [vmem:[#allocation2 + $0x488] sm:$0xff] }
  0x75   :  { %2054 = vmatpush.bf16.msrb.mxu3 %v3163_v27  ;;  %v3192_v27 = vld [vmem:[#allocation2 + $0x4c8] sm:$0xff] }
  0x76   :  { %2013 = vmatpush.bf16.msrb.mxu0 %v3138_v28  ;;  %v3167_v28 = vld [vmem:[#allocation2 + $0x400] sm:$0xff] }
  0x77   :  { %2027 = vmatpush.bf16.msrb.mxu1 %v3146_v33  ;;  %v3175_v33 = vld [vmem:[#allocation2 + $0x440] sm:$0xff] }
  0x78   :  { %2041 = vmatpush.bf16.msrb.mxu2 %v3154_v34  ;;  %v3183_v34 = vld [vmem:[#allocation2 + $0x480] sm:$0xff] }
  0x79   :  { %2055 = vmatpush.bf16.msrb.mxu3 %v3162_v35  ;;  %v3191_v35 = vld [vmem:[#allocation2 + $0x4c0] sm:$0xff] }
  0x7a   :  { %2014 = vmatpush.bf16.msrb.mxu0 %v3137_v36  ;;  %v3206_v36 = vld [vmem:[#allocation2 + $0x538] sm:$0xff] }
  0x7b   :  { %2028 = vmatpush.bf16.msrb.mxu1 %v3145_v37  ;;  %v3214_v37 = vld [vmem:[#allocation2 + $0x578] sm:$0xff] }
  0x7c   :  { %2042 = vmatpush.bf16.msrb.mxu2 %v3153_v38  ;;  %v3222_v38 = vld [vmem:[#allocation2 + $0x5b8] sm:$0xff] }
  0x7d   :  { %2056 = vmatpush.bf16.msrb.mxu3 %v3161_v39  ;;  %v3230_v39 = vld [vmem:[#allocation2 + $0x5f8] sm:$0xff] }
  0x7e   :  { %2015 = vmatpush.bf16.msrb.mxu0 %v3136_v40  ;;  %v221_v40 = vld.sshfl [vmem:[#allocation1] sm:$0xff pattern:$0x73625140] }
  0x7f   :  { %2029 = vmatpush.bf16.msrb.mxu1 %v3144_v41  ;;  %v223_v41 = vld.sshfl [vmem:[#allocation1 + $0x10] sm:$0xff pattern:$0x73625140] }
  0x80   :  { %2043 = vmatpush.bf16.msrb.mxu2 %v3152_v49  ;;  %v222_v49 = vld.sshfl [vmem:[#allocation1 + $0x8] sm:$0xff pattern:$0x73625140] }
  0x81   :  { %2057 = vmatpush.bf16.msrb.mxu3 %v3160_v51  ;;  %v224_v51 = vld.sshfl [vmem:[#allocation1 + $0x18] sm:$0xff pattern:$0x73625140]  ;;  %v294_v18 = vpack.c.bf16 %v222_v49, %v3382_v30  ;;  %v3204_v30 = vld [vmem:[#allocation2 + $0x528] sm:$0xff] }
  0x82   :  { %2016 = vmatpush.bf16.msrb.mxu0 %v3135_v52  ;;  %v59_v52 = vld [vmem:[%s3509_s0 + $0xe8] sm:$0xff]  ;;  %v296_v55 = vpack.c.bf16 %v224_v51, %v3386_v32  ;;  %v3220_v32 = vld [vmem:[#allocation2 + $0x5a8] sm:$0xff] }
  0x83   :  { %2030 = vmatpush.bf16.msrb.mxu1 %v3143_v53  ;;  %v65_v53 = vld [vmem:[%s3509_s0 + $0x118] sm:$0xff]  ;;  %217 = vst [vmem:[#allocation1 + $0x20] ss:$4 sm:$0xff] %v59_v52 }
  0x84   :  { %2044 = vmatpush.bf16.msrb.mxu2 %v3151_v10  ;;  %v71_v10 = vld [vmem:[%s3509_s0 + $0x148] sm:$0xff]  ;;  %218 = vst [vmem:[#allocation1 + $0x21] ss:$4 sm:$0xff] %v65_v53 }
  0x85   :  { %2058 = vmatpush.bf16.msrb.mxu3 %v3159_v15  ;;  %2017 = vmatmul.bf16.vlgmr.msrb.gmra.mxu0 %v289_v60  ;;  %v293_v15 = vpack.c.bf16 %v221_v40, %v3380_v29  ;;  %219 = vst [vmem:[#allocation1 + $0x22] ss:$4 sm:$0xff] %v71_v10  ;;  %v3221_v29 = vld [vmem:[#allocation2 + $0x5b0] sm:$0xff]  ;;  %v3203_v60 = vld [vmem:[#allocation2 + $0x520] sm:$0xff] }
  0x86   :  { %2065 = vmatpush.bf16.msra.mxu0 %v3174_v54  ;;  %2031 = vmatmul.bf16.vlgmr.msrb.gmra.mxu1 %v290_v63  ;;  %v295_v54 = vpack.c.bf16 %v223_v41, %v3384_v31  ;;  %v3229_v31 = vld [vmem:[#allocation2 + $0x5f0] sm:$0xff]  ;;  %v3227_v63 = vld [vmem:[#allocation2 + $0x5e0] sm:$0xff] }
  0x87   :  { %2079 = vmatpush.bf16.msra.mxu1 %v3182_v13  ;;  %2045 = vmatmul.bf16.vlgmr.msrb.gmra.mxu2 %v291_v61  ;;  %v77_v13 = vld [vmem:[%s3509_s0 + $0x178] sm:$0xff]  ;;  %v3211_v61 = vld [vmem:[#allocation2 + $0x560] sm:$0xff] }
  0x88   :  { %2093 = vmatpush.bf16.msra.mxu2 %v3190_v58  ;;  %2059 = vmatmul.bf16.vlgmr.msrb.gmra.mxu3 %v292_v0  ;;  %220 = vst [vmem:[#allocation1 + $0x23] ss:$4 sm:$0xff] %v77_v13  ;;  %v3212_v58 = vld [vmem:[#allocation2 + $0x568] sm:$0xff]  ;;  %v3202_v0 = vld [vmem:[#allocation2 + $0x518] sm:$0xff] }
  0x89   :  { %2107 = vmatpush.bf16.msra.mxu3 %v3198_v59  ;;  %v3228_v59 = vld [vmem:[#allocation2 + $0x5e8] sm:$0xff] }
  0x8a   :  { %2066 = vmatpush.bf16.msra.mxu0 %v3173_v44  ;;  %v3226_v44 = vld [vmem:[#allocation2 + $0x5d8] sm:$0xff] }
  0x8b   :  { %2080 = vmatpush.bf16.msra.mxu1 %v3181_v47  ;;  %v3201_v47 = vld [vmem:[#allocation2 + $0x510] sm:$0xff] }
  0x8c   :  { %2094 = vmatpush.bf16.msra.mxu2 %v3189_v43  ;;  %v3217_v43 = vld [vmem:[#allocation2 + $0x590] sm:$0xff] }
  0x8d   :  { %2108 = vmatpush.bf16.msra.mxu3 %v3197_v50  ;;  %v3225_v50 = vld [vmem:[#allocation2 + $0x5d0] sm:$0xff] }
  0x8e   :  { %2067 = vmatpush.bf16.msra.mxu0 %v3172_v48  ;;  %v3200_v48 = vld [vmem:[#allocation2 + $0x508] sm:$0xff] }
  0x8f   :  { %2081 = vmatpush.bf16.msra.mxu1 %v3180_v1  ;;  %v3208_v1 = vld [vmem:[#allocation2 + $0x548] sm:$0xff] }
  0x90   :  { %2095 = vmatpush.bf16.msra.mxu2 %v3188_v6  ;;  %v3216_v6 = vld [vmem:[#allocation2 + $0x588] sm:$0xff] }
  0x91   :  { %2109 = vmatpush.bf16.msra.mxu3 %v3196_v12  ;;  %v3224_v12 = vld [vmem:[#allocation2 + $0x5c8] sm:$0xff] }
  0x92   :  { %2068 = vmatpush.bf16.msra.mxu0 %v3171_v14  ;;  %v3199_v14 = vld [vmem:[#allocation2 + $0x500] sm:$0xff] }
  0x93   :  { %2082 = vmatpush.bf16.msra.mxu1 %v3179_v16  ;;  %v3207_v16 = vld [vmem:[#allocation2 + $0x540] sm:$0xff] }
  0x94   :  { %2096 = vmatpush.bf16.msra.mxu2 %v3187_v17  ;;  %v3215_v17 = vld [vmem:[#allocation2 + $0x580] sm:$0xff] }
  0x95   :  { %2110 = vmatpush.bf16.msra.mxu3 %v3195_v2  ;;  %v3223_v2 = vld [vmem:[#allocation2 + $0x5c0] sm:$0xff] }
  0x96   :  { %2069 = vmatpush.bf16.msra.mxu0 %v3170_v4  ;;  %v225_v4 = vld.sshfl [vmem:[#allocation1 + $0x20] sm:$0xff pattern:$0x73625140] }
  0x97   :  { %2083 = vmatpush.bf16.msra.mxu1 %v3178_v3  ;;  %v226_v3 = vld.sshfl [vmem:[#allocation1 + $0x28] sm:$0xff pattern:$0x73625140] }
  0x98   :  { %2097 = vmatpush.bf16.msra.mxu2 %v3186_v5  ;;  %v227_v5 = vld.sshfl [vmem:[#allocation1 + $0x30] sm:$0xff pattern:$0x73625140] }
  0x99   :  { %2111 = vmatpush.bf16.msra.mxu3 %v3194_v19  ;;  %v228_v19 = vld.sshfl [vmem:[#allocation1 + $0x38] sm:$0xff pattern:$0x73625140] }
  0x9a   :  { %2070 = vmatpush.bf16.msra.mxu0 %v3169_v20  ;;  %v297_v20 = vpack.c.bf16 %v225_v4, %v3424_v7 }
  0x9b   :  { %2084 = vmatpush.bf16.msra.mxu1 %v3177_v21  ;;  %v298_v21 = vpack.c.bf16 %v226_v3, %v3426_v8 }
  0x9c   :  { %2098 = vmatpush.bf16.msra.mxu2 %v3185_v22  ;;  %v299_v22 = vpack.c.bf16 %v227_v5, %v3428_v9  ;;  %v3234_v9 = vld [vmem:[%s3511_s2] ss:$0 sm:$0xff] }
  0x9d   :  { %2112 = vmatpush.bf16.msra.mxu3 %v3193_v23  ;;  %v300_v23 = vpack.c.bf16 %v228_v19, %v3430_v11 }
  0x9e   :  { %2071 = vmatpush.bf16.msra.mxu0 %v3168_v24 }
  0x9f   :  { %2085 = vmatpush.bf16.msra.mxu1 %v3176_v25 }
  0xa0   :  { %2099 = vmatpush.bf16.msra.mxu2 %v3184_v26 }
  0xa1   :  { %2113 = vmatpush.bf16.msra.mxu3 %v3192_v27 }
  0xa2   :  { %2072 = vmatpush.bf16.msra.mxu0 %v3167_v28 }
  0xa3   :  { %2086 = vmatpush.bf16.msra.mxu1 %v3175_v33 }
  0xa4   :  { %2100 = vmatpush.bf16.msra.mxu2 %v3183_v34 }
  0xa5   :  { %2114 = vmatpush.bf16.msra.mxu3 %v3191_v35  ;;  %2073 = vmatmul.bf16.vlgmr.msra.gmra.mxu0 %v293_v15 }
  0xa6   :  { %2121 = vmatpush.bf16.msrb.mxu0 %v3206_v36  ;;  %2087 = vmatmul.bf16.vlgmr.msra.gmra.mxu1 %v294_v18 }
  0xa7   :  { %2135 = vmatpush.bf16.msrb.mxu1 %v3214_v37  ;;  %2101 = vmatmul.bf16.vlgmr.msra.gmra.mxu2 %v295_v54 }
  0xa8   :  { %2149 = vmatpush.bf16.msrb.mxu2 %v3222_v38  ;;  %2115 = vmatmul.bf16.vlgmr.msra.gmra.mxu3 %v296_v55 }
  0xa9   :  { %2163 = vmatpush.bf16.msrb.mxu3 %v3230_v39 }
  0xaa   :  { %2122 = vmatpush.bf16.msrb.mxu0 %v3205_v56 }
  0xab   :  { %2136 = vmatpush.bf16.msrb.mxu1 %v3213_v57 }
  0xac   :  { %2150 = vmatpush.bf16.msrb.mxu2 %v3221_v29 }
  0xad   :  { %2164 = vmatpush.bf16.msrb.mxu3 %v3229_v31 }
  0xae   :  { %2123 = vmatpush.bf16.msrb.mxu0 %v3204_v30 }
  0xaf   :  { %2137 = vmatpush.bf16.msrb.mxu1 %v3212_v58 }
  0xb0   :  { %2151 = vmatpush.bf16.msrb.mxu2 %v3220_v32 }
  0xb1   :  { %2165 = vmatpush.bf16.msrb.mxu3 %v3228_v59 }
  0xb2   :  { %2124 = vmatpush.bf16.msrb.mxu0 %v3203_v60 }
  0xb3   :  { %2138 = vmatpush.bf16.msrb.mxu1 %v3211_v61 }
  0xb4   :  { %2152 = vmatpush.bf16.msrb.mxu2 %v3219_v62 }
  0xb5   :  { %2166 = vmatpush.bf16.msrb.mxu3 %v3227_v63 }
  0xb6   :  { %2125 = vmatpush.bf16.msrb.mxu0 %v3202_v0 }
  0xb7   :  { %2139 = vmatpush.bf16.msrb.mxu1 %v3210_v45 }
  0xb8   :  { %2153 = vmatpush.bf16.msrb.mxu2 %v3218_v42 }
  0xb9   :  { %2167 = vmatpush.bf16.msrb.mxu3 %v3226_v44 }
  0xba   :  { %2126 = vmatpush.bf16.msrb.mxu0 %v3201_v47 }
  0xbb   :  { %2140 = vmatpush.bf16.msrb.mxu1 %v3209_v46 }
  0xbc   :  { %2154 = vmatpush.bf16.msrb.mxu2 %v3217_v43  ;;  %v1850_v24 = vpop.f32.mrf.mxu0 }
  0xbd   :  { %2168 = vmatpush.bf16.msrb.mxu3 %v3225_v50  ;;  %v1864_v25 = vpop.f32.mrf.mxu1  ;;  %v1851_v36 = vadd.f32 %v3234_v9, %v1850_v24 }
  0xbe   :  { %2127 = vmatpush.bf16.msrb.mxu0 %v3200_v48 }
  0xbf   :  { %2141 = vmatpush.bf16.msrb.mxu1 %v3208_v1  ;;  %v1865_v39 = vadd.f32 %v1864_v25, %v1851_v36 }
  0xc0   :  { %2155 = vmatpush.bf16.msrb.mxu2 %v3216_v6 }
  0xc1   :  { %2169 = vmatpush.bf16.msrb.mxu3 %v3224_v12  ;;  %v1878_v26 = vpop.f32.mrf.mxu2 }
  0xc2   :  { %2128 = vmatpush.bf16.msrb.mxu0 %v3199_v14  ;;  %v1879_v41 = vadd.f32 %v1878_v26, %v1865_v39 }
  0xc3   :  { %2142 = vmatpush.bf16.msrb.mxu1 %v3207_v16 }
  0xc4   :  { %2156 = vmatpush.bf16.msrb.mxu2 %v3215_v17  ;;  %v1852_v28 = vpop.f32.mrf.mxu0 }
  0xc5   :  { %2170 = vmatpush.bf16.msrb.mxu3 %v3223_v2  ;;  %2129 = vmatmul.bf16.vlgmr.msrb.gmra.mxu0 %v297_v20  ;;  %v1892_v27 = vpop.f32.mrf.mxu3  ;;  %v1866_v7 = vpop.f32.mrf.mxu1 }
  0xc6   :  { %2143 = vmatmul.bf16.vlgmr.msrb.gmra.mxu1 %v298_v21  ;;  %v1893_v53 = vadd.f32 %v1892_v27, %v1879_v41 }
  0xc7   :  { %2157 = vmatmul.bf16.vlgmr.msrb.gmra.mxu2 %v299_v22 }
  0xc8   :  { %2171 = vmatmul.bf16.vlgmr.msrb.gmra.mxu3 %v300_v23 }
  0xc9   :  { %v1880_v33 = vpop.f32.mrf.mxu2 }
  0xcc   :  { %v1906_v34 = vpop.f32.mrf.mxu0 }
  0xcd   :  { %v1894_v8 = vpop.f32.mrf.mxu3  ;;  %v1920_v35 = vpop.f32.mrf.mxu1  ;;  %v1907_v15 = vadd.f32 %v1906_v34, %v1893_v53 }
  0xcf   :  { %v1921_v18 = vadd.f32 %v1920_v35, %v1907_v15 }
  0xd4   :  { %v1934_v11 = vpop.f32.mrf.mxu2  ;;  %v1908_v38 = vpop.f32.mrf.mxu0 }
  0xd5   :  { %v1948_v37 = vpop.f32.mrf.mxu3  ;;  %v1922_v40 = vpop.f32.mrf.mxu1  ;;  %v1935_v57 = vadd.f32 %v1934_v11, %v1921_v18 }
  0xd7   :  { %v1949_v31 = vadd.f32 %v1948_v37, %v1935_v57 }
  0xdc   :  { %v1936_v49 = vpop.f32.mrf.mxu2 }
  0xdd   :  { %v1950_v51 = vpop.f32.mrf.mxu3 }
  0xe2   :  { %v1962_v52 = vpop.f32.mrf.mxu0 }
  0xe3   :  { %v1976_v10 = vpop.f32.mrf.mxu1  ;;  %v1963_v32 = vadd.f32 %v1962_v52, %v1949_v31 }
  0xe5   :  { %v1977_v60 = vadd.f32 %v1976_v10, %v1963_v32 }
  0xea   :  { %v1990_v54 = vpop.f32.mrf.mxu2  ;;  %v1964_v55 = vpop.f32.mrf.mxu0 }
  0xeb   :  { %v2004_v13 = vpop.f32.mrf.mxu3  ;;  %v1978_v56 = vpop.f32.mrf.mxu1  ;;  %v1991_v62 = vadd.f32 %v1990_v54, %v1977_v60 }
  0xed   :  { %v2005_v45 = vadd.f32 %v2004_v13, %v1991_v62 }
  0xf2   :  { %v1992_v29 = vpop.f32.mrf.mxu2 }
  0xf3   :  { %v2006_v30 = vpop.f32.mrf.mxu3 }
 0x102   :  { %v2018_v58 = vpop.f32.mrf.mxu0 }
 0x103   :  { %v2032_v59 = vpop.f32.mrf.mxu1  ;;  %v2019_v44 = vadd.f32 %v2018_v58, %v2005_v45 }
 0x105   :  { %v2033_v46 = vadd.f32 %v2032_v59, %v2019_v44 }
 0x10a   :  { %v2046_v61 = vpop.f32.mrf.mxu2  ;;  %v2020_v0 = vpop.f32.mrf.mxu0 }
 0x10b   :  { %v2060_v63 = vpop.f32.mrf.mxu3  ;;  %v2034_v42 = vpop.f32.mrf.mxu1  ;;  %v2047_v48 = vadd.f32 %v2046_v61, %v2033_v46 }
 0x10d   :  { %v2061_v6 = vadd.f32 %v2060_v63, %v2047_v48 }
 0x112   :  { %v2048_v47 = vpop.f32.mrf.mxu2 }
 0x113   :  { %v2062_v43 = vpop.f32.mrf.mxu3 }
 0x122   :  { %v2074_v50 = vpop.f32.mrf.mxu0 }
 0x123   :  { %v2088_v1 = vpop.f32.mrf.mxu1  ;;  %v2075_v14 = vadd.f32 %v2074_v50, %v2061_v6 }
 0x125   :  { %v2089_v2 = vadd.f32 %v2088_v1, %v2075_v14 }
 0x12a   :  { %v2102_v12 = vpop.f32.mrf.mxu2  ;;  %v2076_v17 = vpop.f32.mrf.mxu0 }
 0x12b   :  { %v2116_v16 = vpop.f32.mrf.mxu3  ;;  %v2090_v4 = vpop.f32.mrf.mxu1  ;;  %v2103_v3 = vadd.f32 %v2102_v12, %v2089_v2 }
 0x12d   :  { %v2117_v19 = vadd.f32 %v2116_v16, %v2103_v3 }
 0x132   :  { %v2104_v5 = vpop.f32.mrf.mxu2 }
 0x133   :  { %v2118_v20 = vpop.f32.mrf.mxu3 }
 0x142   :  { %v2130_v21 = vpop.f32.mrf.mxu0 }
 0x143   :  { %v2131_v22 = vadd.f32 %v2130_v21, %v2117_v19  ;;  %v2144_v23 = vpop.f32.mrf.mxu1 }
 0x145   :  { %v2145_v24 = vadd.f32 %v2144_v23, %v2131_v22 }
 0x14a   :  { %v2158_v25 = vpop.f32.mrf.mxu2  ;;  %v2132_v28 = vpop.f32.mrf.mxu0 }
 0x14b   :  { %v2159_v26 = vadd.f32 %v2158_v25, %v2145_v24  ;;  %v2172_v27 = vpop.f32.mrf.mxu3  ;;  %v2146_v8 = vpop.f32.mrf.mxu1 }
 0x14d   :  { %v2173_v7 = vadd.f32 %v2172_v27, %v2159_v26 }
 0x14f   :  { %v2177_v33 = vmax.f32 %v2173_v7, 0.0 }
 0x151   :  { %v2179_v34 = vpack.c.bf16 %v2177_v33, %v2177_v33 }
 0x152   :  { %v2160_v35 = vpop.f32.mrf.mxu2 }
 0x153   :  { %v2183_v9 = vrot.slane %v2179_v34, 3  ;;  %v2174_v36 = vpop.f32.mrf.mxu3 }
 0x155   :  { %v2188_v11 = vsel %vm2185_vm0, %v2179_v34, %v2183_v9 }
 0x156   :  { %2221 = vst [vmem:[#allocation4] sm:$0x1] %v2188_v11 }
 0x15d   :  { %v2247_v37 = vld [vmem:[#allocation4] sm:$0x1] }
 0x15e   :  { %2248 = vst [vmem:[%s3512_s3] sm:$0x1] %v2247_v37 }
 0x15f   :  { %2266 = vsyncpa [#allocation3], 1 }

</bundles_post_ra>
